<compile_context>
chip_gen: v6e
topology: v6e:2x2x1
jax: 0.10.0
libtpu: 0.0.40
codegen_flags: <defaults>
</compile_context>

<pallas_src>
import functools

import jax
import jax.numpy as jnp
from jax.experimental import pallas as pl
from jax.experimental.pallas import tpu as pltpu


def _round_up(a: int, b: int) -> int:
    return pl.cdiv(a, b) * b


def _conv1d_kernel_acc(x_ref, w_ref, b_ref, o_ref, acc_ref):
    """Multi-K-tile path: accumulate over the K grid axis in f32 scratch."""
    @pl.when(pl.program_id(2) == 0)
    def _():
        acc_ref[...] = jnp.zeros_like(acc_ref)

    acc_ref[...] += jnp.dot(
        x_ref[...], w_ref[...], preferred_element_type=jnp.float32
    )

    @pl.when(pl.program_id(2) == pl.num_programs(2) - 1)
    def _():
        o_ref[...] = (
            acc_ref[...] + b_ref[...].astype(jnp.float32)
        ).astype(o_ref.dtype)


def _conv1d_kernel_single_k(x_ref, w_ref, b_ref, o_ref):
    """Single-K-tile fast path: no scratch accumulator, no phase gating."""
    o_ref[...] = (
        jnp.dot(x_ref[...], w_ref[...], preferred_element_type=jnp.float32)
        + b_ref[...].astype(jnp.float32)
    ).astype(o_ref.dtype)


def _pick_tiles(M: int, nx: int, nf: int):
    # Bounded tiles, (8,128)/MXU aligned.  Caps chosen so the double-buffered
    # working set (~11 MiB f32 / ~6 MiB bf16) fits comfortably inside v7x's
    # 64 MiB physical VMEM while still being large enough to amortize the
    # ~0.35us per-grid-step overhead and minimize weight re-streaming.
    tm = min(512, _round_up(M, 8))
    tn = min(512, _round_up(nf, 128))
    tk = min(1024, _round_up(nx, 128))
    return tm, tn, tk


@functools.partial(jax.jit, static_argnames=("compute_dtype",))
def conv1d(x, weight, bias, *, compute_dtype=None):
    """GPT-2 Conv1D forward: x @ weight + bias.

    x: (..., nx), weight: (nx, nf), bias: (nf,)
    compute_dtype: optional dtype (e.g. jnp.bfloat16) to feed the MXU;
        accumulation stays in f32, output dtype matches x.
    returns: (..., nf)
    """
    nx, nf = weight.shape
    out_dtype = x.dtype
    size_out = x.shape[:-1] + (nf,)
    x2d = x.reshape(-1, nx)
    M = x2d.shape[0]

    if compute_dtype is not None:
        x2d = x2d.astype(compute_dtype)
        weight = weight.astype(compute_dtype)

    tm, tn, tk = _pick_tiles(M, nx, nf)

    # Zero-pad to tile multiples so every block is full-sized (correct with a
    # cdiv grid; padded K contributes zeros, padded M/N is sliced off below).
    Mp, Kp, Np = _round_up(M, tm), _round_up(nx, tk), _round_up(nf, tn)
    if (Mp, Kp) != (M, nx):
        x2d = jnp.pad(x2d, ((0, Mp - M), (0, Kp - nx)))
    w2d = weight
    if (Kp, Np) != (nx, nf):
        w2d = jnp.pad(w2d, ((0, Kp - nx), (0, Np - nf)))
    b2d = bias.reshape(1, nf)
    if Np != nf:
        b2d = jnp.pad(b2d, ((0, 0), (0, Np - nf)))

    grid = (Mp // tm, Np // tn, Kp // tk)
    single_k = grid[2] == 1

    kernel = _conv1d_kernel_single_k if single_k else _conv1d_kernel_acc
    scratch_shapes = [] if single_k else [pltpu.VMEM((tm, tn), jnp.float32)]

    # VMEM budget: double-buffered input/output tiles + f32 accumulator.
    in_item = jnp.dtype(x2d.dtype).itemsize
    out_item = jnp.dtype(out_dtype).itemsize
    vmem_need = (
        2 * (tm * tk * in_item + tk * tn * in_item + tm * tn * out_item)
        + tm * tn * 4  # accumulator
        + tn * 4       # bias tile
    )
    vmem_limit = int(min(max(int(vmem_need * 1.5), 32 << 20), 48 << 20))

    cost = pl.CostEstimate(
        flops=2 * M * nx * nf,
        transcendentals=0,
        bytes_accessed=(
            M * nx * in_item + nx * nf * in_item + nf * 4 + M * nf * out_item
        ),
    )

    out2d = pl.pallas_call(
        kernel,
        out_shape=jax.ShapeDtypeStruct((Mp, Np), out_dtype),
        grid_spec=pltpu.PrefetchScalarGridSpec(
            num_scalar_prefetch=0,
            grid=grid,
            in_specs=[
                pl.BlockSpec((tm, tk), lambda i, j, k: (i, k)),   # x tile
                pl.BlockSpec((tk, tn), lambda i, j, k: (k, j)),   # weight tile
                pl.BlockSpec((1, tn), lambda i, j, k: (0, j)),    # bias tile
            ],
            out_specs=pl.BlockSpec((tm, tn), lambda i, j, k: (i, j)),
            scratch_shapes=scratch_shapes,
        ),
        compiler_params=pltpu.CompilerParams(
            dimension_semantics=("parallel", "parallel", "arbitrary"),
            vmem_limit_bytes=vmem_limit,
        ),
        cost_estimate=cost,
    )(x2d, w2d, b2d)

    if (Mp, Np) != (M, nf):
        out2d = out2d[:M, :nf]
    return out2d.reshape(size_out)


if __name__ == "__main__":
    # Module config: nx (input features), nf (output features).
    batch, seq, nx, nf = 2, 8, 32, 64

    key = jax.random.PRNGKey(0)
    kx, kw = jax.random.split(key)

    # Deterministic parameter init matching the module's __init__:
    # weight ~ Normal(0, 0.02) with shape (nx, nf); bias = zeros(nf).
    weight = (0.02 * jax.random.normal(kw, (nx, nf))).astype(jnp.float32)
    bias = jnp.zeros((nf,), dtype=jnp.float32)

    x = jax.random.normal(kx, (batch, seq, nx), dtype=jnp.float32)

    # Reference (plain JAX) — same semantics as the torch.addmm path.
    ref = (x.reshape(-1, nx) @ weight + bias).reshape(batch, seq, nf)

    # f32 path (exact check).
    out = conv1d(x, weight, bias)
    out = jax.block_until_ready(out)
    assert out.shape == (batch, seq, nf)
    assert jnp.allclose(out, ref, atol=1e-5, rtol=1e-5)

    # bf16-MXU path with f32 accumulation (looser check).
    out_bf16 = conv1d(x, weight, bias, compute_dtype=jnp.bfloat16)
    out_bf16 = jax.block_until_ready(out_bf16)
    assert out_bf16.shape == (batch, seq, nf)
    assert jnp.allclose(out_bf16, ref, atol=5e-2, rtol=5e-2)

    print("KERNEL_OK")
</pallas_src>

<mosaic_0001>
module attributes {stable_mosaic.version = 11 : i64} {
  func.func @_conv1d_kernel_single_k(%arg0: i32, %arg1: i32, %arg2: i32, %arg3: memref<16x128xf32, #tpu.memory_space<vmem>>, %arg4: memref<128x128xf32, #tpu.memory_space<vmem>>, %arg5: memref<1x128xf32, #tpu.memory_space<vmem>>, %arg6: memref<16x128xf32, #tpu.memory_space<vmem>>) attributes {dimension_semantics = [#tpu.dimension_semantics<parallel>, #tpu.dimension_semantics<parallel>, #tpu.dimension_semantics<arbitrary>], iteration_bounds = array<i64: 1, 1, 1>, scalar_prefetch = 0 : i64, scratch_operands = 0 : i64, tpu.core_type = #tpu.core_type<tc>, window_params = [{transform_indices = @transform_0, window_bounds = array<i64: 16, 128>}, {transform_indices = @transform_1, window_bounds = array<i64: 128, 128>}, {transform_indices = @transform_2, window_bounds = array<i64: 1, 128>}, {transform_indices = @transform_3, window_bounds = array<i64: 16, 128>}]} {
    %c0 = arith.constant 0 : index
    %c0_0 = arith.constant 0 : index
    %0 = vector.load %arg3[%c0, %c0_0] : memref<16x128xf32, #tpu.memory_space<vmem>>, vector<16x128xf32>
    %c0_1 = arith.constant 0 : index
    %c0_2 = arith.constant 0 : index
    %1 = vector.load %arg4[%c0_1, %c0_2] : memref<128x128xf32, #tpu.memory_space<vmem>>, vector<128x128xf32>
    %cst = arith.constant dense<0.000000e+00> : vector<16x128xf32>
    %2 = tpu.matmul %0, %1, %cst {dimension_numbers = #tpu.dot_dimension_numbers<[1], [0], [0], [1], [0, 0, 1, 1], [], []>} : vector<16x128xf32>, vector<128x128xf32>, vector<16x128xf32> -> vector<16x128xf32>
    %c0_3 = arith.constant 0 : index
    %c0_4 = arith.constant 0 : index
    %3 = vector.load %arg5[%c0_3, %c0_4] : memref<1x128xf32, #tpu.memory_space<vmem>>, vector<1x128xf32>
    %4 = vector.broadcast %3 : vector<1x128xf32> to vector<16x128xf32>
    %5 = arith.addf %2, %4 : vector<16x128xf32>
    %c0_5 = arith.constant 0 : index
    %c0_6 = arith.constant 0 : index
    %6 = vector.load %arg6[%c0_5, %c0_6] : memref<16x128xf32, #tpu.memory_space<vmem>>, vector<16x128xf32>
    tpu.vector_store %arg6[%c0_5, %c0_6], %5 {strides = array<i32>} : memref<16x128xf32, #tpu.memory_space<vmem>>, vector<16x128xf32>,
    return
  }
  func.func @transform_0(%arg0: i32, %arg1: i32, %arg2: i32) -> (i32, i32) {
    %c0_i32 = arith.constant 0 : i32
    return %arg0, %arg2 : i32, i32
  }
  func.func @transform_1(%arg0: i32, %arg1: i32, %arg2: i32) -> (i32, i32) {
    %c0_i32 = arith.constant 0 : i32
    return %arg2, %arg1 : i32, i32
  }
  func.func @transform_2(%arg0: i32, %arg1: i32, %arg2: i32) -> (i32, i32) {
    %c0_i32 = arith.constant 0 : i32
    %c0_i32_0 = arith.constant 0 : i32
    return %c0_i32, %arg1 : i32, i32
  }
  func.func @transform_3(%arg0: i32, %arg1: i32, %arg2: i32) -> (i32, i32) {
    %c0_i32 = arith.constant 0 : i32
    return %arg0, %arg1 : i32, i32
  }
}

</mosaic_0001>

<bundles_post_ra>
// kernel: conv1d.1
= control target key start
LH: loop header
LB: loop body
LE: loop exit
PB: predicated region body
PF: predicated region fallthrough
CT: control target
= control target key end

     0   :  { %s257_s1 = inlined_call_operand.vmem [shape: f32[128,128], index: 1, kind: input, shape index: {}]   ;;  %s258_s0 = inlined_call_operand.vmem [shape: f32[16,128], index: 0, kind: input, shape index: {}]   ;;  %s259_s2 = inlined_call_operand.vmem [shape: f32[1,128], index: 2, kind: input, shape index: {}]   ;;  %s260_s3 = inlined_call_operand.vmem [shape: f32[16,128], index: 3, kind: output, shape index: {}]  }
   0x1   :  { %v31_v0 = vld [vmem:[%s257_s1 + $0x78] sm:$0xff]  ;;  %v30_v1 = vld [vmem:[%s257_s1 + $0x70] sm:$0xff]  ;;  %v29_v2 = vld [vmem:[%s257_s1 + $0x68] sm:$0xff] }
   0x2   :  { %139 = vmatprep.subr.mxu0 %v31_v0  ;;  %v28_v3 = vld [vmem:[%s257_s1 + $0x60] sm:$0xff]  ;;  %v27_v5 = vld [vmem:[%s257_s1 + $0x58] sm:$0xff]  ;;  %v26_v6 = vld [vmem:[%s257_s1 + $0x50] sm:$0xff] }
   0x3   :  { %140 = vmatpush3.msra.mxu0 %v31_v0  ;;  %v14_v4 = vld [vmem:[%s258_s0] sm:$0xff]  ;;  %v25_v7 = vld [vmem:[%s257_s1 + $0x48] sm:$0xff]  ;;  %v23_v9 = vld [vmem:[%s257_s1 + $0x38] sm:$0xff] }
   0x4   :  { %141 = vmatprep.subr.mxu0 %v30_v1  ;;  %171 = vmatprep.mubr.f32.mxu0 %v14_v4  ;;  %v24_v8 = vld [vmem:[%s257_s1 + $0x40] sm:$0xff]  ;;  %v22_v10 = vld [vmem:[%s257_s1 + $0x30] sm:$0xff]  ;;  %v21_v11 = vld [vmem:[%s257_s1 + $0x28] sm:$0xff] }
   0x5   :  { %142 = vmatpush3.msra.mxu0 %v30_v1  ;;  %v20_v12 = vld [vmem:[%s257_s1 + $0x20] sm:$0xff]  ;;  %v19_v13 = vld [vmem:[%s257_s1 + $0x18] sm:$0xff]  ;;  %v18_v14 = vld [vmem:[%s257_s1 + $0x10] sm:$0xff] }
   0x6   :  { %143 = vmatprep.subr.mxu0 %v29_v2  ;;  %v17_v15 = vld [vmem:[%s257_s1 + $0x8] sm:$0xff]  ;;  %v16_v16 = vld [vmem:[%s257_s1] sm:$0xff] }
   0x7   :  { %144 = vmatpush3.msra.mxu0 %v29_v2  ;;  %v15_v17 = vld [vmem:[%s258_s0 + $0x8] sm:$0xff]  ;;  %v120_v18 = vld [vmem:[%s259_s2] ss:$0 sm:$0xff] }
   0x8   :  { %145 = vmatprep.subr.mxu0 %v28_v3 }
   0x9   :  { %146 = vmatpush3.msra.mxu0 %v28_v3 }
   0xa   :  { %147 = vmatprep.subr.mxu0 %v27_v5 }
   0xb   :  { %148 = vmatpush3.msra.mxu0 %v27_v5 }
   0xc   :  { %149 = vmatprep.subr.mxu0 %v26_v6 }
   0xd   :  { %150 = vmatpush3.msra.mxu0 %v26_v6 }
   0xe   :  { %151 = vmatprep.subr.mxu0 %v25_v7 }
   0xf   :  { %152 = vmatpush3.msra.mxu0 %v25_v7 }
  0x10   :  { %153 = vmatprep.subr.mxu0 %v24_v8 }
  0x11   :  { %154 = vmatpush3.msra.mxu0 %v24_v8 }
  0x12   :  { %155 = vmatprep.subr.mxu0 %v23_v9 }
  0x13   :  { %156 = vmatpush3.msra.mxu0 %v23_v9 }
  0x14   :  { %157 = vmatprep.subr.mxu0 %v22_v10 }
  0x15   :  { %158 = vmatpush3.msra.mxu0 %v22_v10 }
  0x16   :  { %159 = vmatprep.subr.mxu0 %v21_v11 }
  0x17   :  { %160 = vmatpush3.msra.mxu0 %v21_v11 }
  0x18   :  { %161 = vmatprep.subr.mxu0 %v20_v12 }
  0x19   :  { %162 = vmatpush3.msra.mxu0 %v20_v12 }
  0x1a   :  { %163 = vmatprep.subr.mxu0 %v19_v13 }
  0x1b   :  { %164 = vmatpush3.msra.mxu0 %v19_v13 }
  0x1c   :  { %165 = vmatprep.subr.mxu0 %v18_v14 }
  0x1d   :  { %166 = vmatpush3.msra.mxu0 %v18_v14 }
  0x1e   :  { %167 = vmatprep.subr.mxu0 %v17_v15 }
  0x1f   :  { %168 = vmatpush3.msra.mxu0 %v17_v15 }
  0x20   :  { %169 = vmatprep.subr.mxu0 %v16_v16 }
  0x21   :  { %170 = vmatpush3.msra.mxu0 %v16_v16 }
  0x22   :  { %172 = vmatmul.mubr.f32.vlgmr.msra.gmra.mxu0 %v15_v17 }
  0xe2   :  { %v173_v19 = vpop.f32.mrf.mxu0 }
  0xe3   :  { %v111_v20 = vadd.f32 %v173_v19, %v120_v18 }
  0xe4   :  { %v105_v21 = vpop.f32.mrf.mxu0 }
  0xe5   :  { %115 = vst [vmem:[%s260_s3 + $0x8] sm:$0xff] %v111_v20  ;;  %v106_v22 = vadd.f32 %v120_v18, %v105_v21 }
  0xe7   :  { %114 = vst [vmem:[%s260_s3] sm:$0xff] %v106_v22 }

</bundles_post_ra>
